<compile_context>
chip_gen: v7x
topology: tpu7x:2x2x1
jax: 0.10.0
libtpu: 0.0.40
codegen_flags: <defaults>
</compile_context>

<pallas_src>
import functools

import jax
import jax.numpy as jnp
from jax.experimental import pallas as pl
from jax.experimental.pallas import tpu as pltpu

LANES = 128
_MAX_WIDTH = 32768   # widest lane-dense slab considered
_MIN_GRID = 4        # prefer >= 4 grid steps (v7x: 2 TCs + pipeline overlap)


def _residual_kernel(fn, x_ref, o_ref):
    """o = fn(x) + x, computed entirely on the VMEM tile."""
    x = x_ref[...]
    o_ref[...] = (fn(x) + x).astype(o_ref.dtype)


def _sublane_multiple(dtype) -> int:
    # Sub-32-bit dtypes pack along sublanes: f32 -> 8, bf16 -> 16, int8 -> 32.
    itemsize = jnp.dtype(dtype).itemsize
    return max(8, 32 // max(itemsize, 1))


def _vmem_budget():
    """(target_block_bytes, vmem_limit_bytes), sized per TPU generation."""
    cap = None
    try:
        info = pltpu.get_tpu_info()
        cap = getattr(info, "vmem_capacity_bytes", None)
    except Exception:
        cap = None
    if cap is not None and cap >= 100 * 1024 * 1024:
        # v5e / v6e: 128 MiB physical VMEM.  Footprint = 4x block = 64 MiB.
        return 16 * 1024 * 1024, 96 * 1024 * 1024
    # v7x (64 MiB per TensorCore) or unknown: footprint = 4x block = 32 MiB.
    return 8 * 1024 * 1024, 48 * 1024 * 1024


def _pick_width(n, sub):
    """Largest width = 128*k (<= _MAX_WIDTH) that exactly divides n,
    preferring widths that leave at least `sub` rows.  0 if n % 128 != 0."""
    kmax = min(n // LANES, _MAX_WIDTH // LANES)
    width_any = 0
    for k in range(kmax, 0, -1):
        w = k * LANES
        if n % w == 0:
            if width_any == 0:
                width_any = w
            if (n // w) >= sub:
                return w
    return width_any


def _pick_block_rows(rows, sub, row_bytes, target_block_bytes):
    """Rows per block: a multiple of `sub`, near the byte target, preferring
    an exact divisor of `rows` (no partial trailing block) and a grid with at
    least _MIN_GRID steps when the tensor is large enough."""
    target = max(sub, (target_block_bytes // row_bytes) // sub * sub)
    upper = min(rows, target)
    if rows >= _MIN_GRID * sub:
        upper = min(upper, max(sub, rows // _MIN_GRID))
    upper = max(sub, (upper // sub) * sub)
    # Prefer an exact divisor of rows (unmasked stores, no clamped tail DMA).
    d, steps = upper, 0
    while d >= sub and steps < 4096:
        if rows % d == 0:
            return d
        d -= sub
        steps += 1
    return min(upper, rows)


def residual(fn, x, *, flops_per_element=8, transcendentals_per_element=1,
             donate=False):
    """Pallas implementation of `Residual(fn)(x)` for tile-local (elementwise) fn.

    fn must be strictly elementwise (maps a tile to a same-shaped tile with no
    axis/shape dependence).  Non-tile-local fn (convs, attention, norms, ...)
    must be computed in plain JAX / its own kernel with only `+ x` fused here.
    Callers that no longer need `x` should pass donate=True (and donate the
    buffer at their jit boundary) so the output aliases x's HBM buffer.
    """
    orig_shape = x.shape
    dtype = x.dtype
    n = x.size
    itemsize = jnp.dtype(dtype).itemsize
    sub = _sublane_multiple(dtype)

    width = _pick_width(n, sub)
    if width == 0:
        # n not a multiple of 128: a standalone kernel would need a padding
        # copy costing more than the op; run the reference semantics in XLA.
        # TODO(synk): fuse `+ x` into fn's producer kernel in the real model.
        return fn(x) + x

    rows = n // width
    slab = x.reshape(rows, width)  # pure reshape: no HBM copy, no padding

    target_block_bytes, vmem_limit = _vmem_budget()
    if rows <= sub:
        block_rows = rows          # block == full dim is always legal
    else:
        block_rows = _pick_block_rows(rows, sub, width * itemsize,
                                      target_block_bytes)

    grid = (pl.cdiv(rows, block_rows),)
    block = (block_rows, width)

    cost = pl.CostEstimate(
        flops=flops_per_element * n,
        transcendentals=transcendentals_per_element * n,
        bytes_accessed=2 * n * itemsize,
    )

    out = pl.pallas_call(
        functools.partial(_residual_kernel, fn),
        out_shape=jax.ShapeDtypeStruct((rows, width), dtype),
        grid_spec=pltpu.PrefetchScalarGridSpec(
            num_scalar_prefetch=0,
            grid=grid,
            in_specs=[pl.BlockSpec(block, lambda i: (i, 0))],
            out_specs=pl.BlockSpec(block, lambda i: (i, 0)),
        ),
        compiler_params=pltpu.CompilerParams(
            dimension_semantics=("parallel",),
            vmem_limit_bytes=vmem_limit,
        ),
        cost_estimate=cost,
        input_output_aliases=({0: 0} if donate else {}),
    )(slab)

    return out.reshape(orig_shape)


if __name__ == "__main__":
    key = jax.random.PRNGKey(0)
    # NCHW, matching the PyTorch convention of the surrounding model.
    x = jax.random.normal(key, (2, 4, 16, 16), dtype=jnp.float32)

    # Example fn wrapped by Residual: tanh-approx GELU (EUP path, stays cheap).
    fn = jax.nn.gelu

    ref = fn(x) + x

    # Default (non-donating) path.
    y = jax.block_until_ready(residual(fn, x))
    assert y.shape == x.shape and y.dtype == x.dtype
    assert jnp.allclose(y, ref, atol=1e-5, rtol=1e-5), "mismatch vs reference"

    # Donated / aliased path: output written back into the input buffer.
    x2 = x + 0.0
    run_donated = jax.jit(lambda a: residual(fn, a, donate=True),
                          donate_argnums=0)
    y2 = jax.block_until_ready(run_donated(x2))
    assert jnp.allclose(y2, ref, atol=1e-5, rtol=1e-5), "mismatch (donated)"

    # Larger shape: exercises the divisor-snapped multi-step (>=4) grid.
    xl = jax.random.normal(jax.random.PRNGKey(1), (8, 32, 64, 64),
                           dtype=jnp.float32)
    yl = jax.block_until_ready(residual(fn, xl))
    assert jnp.allclose(yl, fn(xl) + xl, atol=1e-5, rtol=1e-5), "mismatch (large)"

    print("KERNEL_OK")
</pallas_src>

<mosaic_0001>
module attributes {stable_mosaic.version = 11 : i64} {
  func.func @_residual_kernel(%arg0: i32, %arg1: memref<8x256xf32, #tpu.memory_space<vmem>>, %arg2: memref<8x256xf32, #tpu.memory_space<vmem>>) attributes {dimension_semantics = [#tpu.dimension_semantics<parallel>], iteration_bounds = array<i64: 1>, scalar_prefetch = 0 : i64, scratch_operands = 0 : i64, tpu.core_type = #tpu.core_type<tc>, window_params = [{transform_indices = @transform_0, window_bounds = array<i64: 8, 256>}, {transform_indices = @transform_1, window_bounds = array<i64: 8, 256>}]} {
    %c0 = arith.constant 0 : index
    %c0_0 = arith.constant 0 : index
    %0 = vector.load %arg1[%c0, %c0_0] : memref<8x256xf32, #tpu.memory_space<vmem>>, vector<8x256xf32>
    %1 = arith.mulf %0, %0 : vector<8x256xf32>
    %2 = arith.mulf %0, %1 : vector<8x256xf32>
    %cst = arith.constant 4.471500e-02 : f32
    %3 = vector.broadcast %cst : f32 to vector<8x256xf32>
    %4 = arith.mulf %3, %2 : vector<8x256xf32>
    %5 = arith.addf %0, %4 : vector<8x256xf32>
    %cst_1 = arith.constant 0.797884583 : f32
    %6 = vector.broadcast %cst_1 : f32 to vector<8x256xf32>
    %7 = arith.mulf %6, %5 : vector<8x256xf32>
    %8 = math.tanh %7 : vector<8x256xf32>
    %cst_2 = arith.constant 1.000000e+00 : f32
    %9 = vector.broadcast %cst_2 : f32 to vector<8x256xf32>
    %10 = arith.addf %9, %8 : vector<8x256xf32>
    %cst_3 = arith.constant 5.000000e-01 : f32
    %11 = vector.broadcast %cst_3 : f32 to vector<8x256xf32>
    %12 = arith.mulf %11, %10 : vector<8x256xf32>
    %13 = arith.mulf %0, %12 : vector<8x256xf32>
    %14 = arith.addf %13, %0 : vector<8x256xf32>
    %c0_4 = arith.constant 0 : index
    %c0_5 = arith.constant 0 : index
    %15 = vector.load %arg2[%c0_4, %c0_5] : memref<8x256xf32, #tpu.memory_space<vmem>>, vector<8x256xf32>
    tpu.vector_store %arg2[%c0_4, %c0_5], %14 {strides = array<i32>} : memref<8x256xf32, #tpu.memory_space<vmem>>, vector<8x256xf32>,
    return
  }
  func.func @transform_0(%arg0: i32) -> (i32, i32) {
    %c0_i32 = arith.constant 0 : i32
    %c0_i32_0 = arith.constant 0 : i32
    return %arg0, %c0_i32 : i32, i32
  }
  func.func @transform_1(%arg0: i32) -> (i32, i32) {
    %c0_i32 = arith.constant 0 : i32
    %c0_i32_0 = arith.constant 0 : i32
    return %arg0, %c0_i32 : i32, i32
  }
}

</mosaic_0001>

<bundles_post_ra>
// kernel: tpu_custom_call.1
= control target key start
LH: loop header
LB: loop body
LE: loop exit
PB: predicated region body
PF: predicated region fallthrough
CT: control target
= control target key end

     0   :  { %6 = vsyncpa [#allocation3], 0  ;;  %s150_s0 = inlined_call_operand.hbm [shape: f32[8,256], index: 0, kind: input, shape index: {}]   ;;  %s151_s1 = inlined_call_operand.hbm [shape: f32[8,256], index: 1, kind: output, shape index: {}]  }
   0x1   :  { %7 = vsyncpa [#allocation4], 0  ;;  %s114_s6 = smov [#allocation2]   ;;  %s66_s10 = scalar_lea.hbm %s150_s0, 256 }
   0x2   :  { %s14_s7 = sshll.u32 %s114_s6, 4  ;;  %p67_p0 = scmp.ne.s32.totalorder %s150_s0, %s66_s10  ;;  %s15_s7 = int_to_ptr.vmem [resolvable:$true] %s14_s7 }
   0x3   :  { %p70_p1 = scmp.lt.u32.totalorder %s66_s10, %s150_s0 }
   0x5   :  { %p72_p2 = pnand %p70_p1, %p67_p0 }
   0x7   :  { %75 = shalt.err (!%p72_p2)
}
   0x8   :  { %s76_s15 = scalar_lea.vmem %s15_s7, 256  ;;  %p81_p4 = scmp.lt.s32.totalorder %s15_s7, %s15_s7 }
   0x9   :  { %p77_p3 = scmp.ne.s32.totalorder %s15_s7, %s76_s15  ;;  %p82_p5 = scmp.lt.s32.totalorder %s76_s15, %s76_s15 }
   0xb   :  { %p83_p6 = por %p82_p5, %p81_p4 }
   0xd   :  { %p84_p7 = pnand %p83_p6, %p77_p3 }
   0xf   :  { %87 = shalt.err (!%p84_p7)
}
  0x10   :  { %17 = dma.hbm_to_vmem [thread:$0]  %s150_s0, 256, %s15_s7, [#allocation3]  }
  0x11   :  { %110 = dma.done.wait [#allocation3], 256  }
  0x12   :  { %111 = vsyncadd [#allocation3], 4294967040  ;;  %v21_v0 = vld [vmem:[#allocation2] sm:$0xff]  ;;  %v22_v1 = vld [vmem:[#allocation2 + $0x8] sm:$0xff]  ;;  %s115_s0 = smov [#allocation5]  }
  0x13   :  { %v23_v2 = vmul.f32 %v21_v0, %v21_v0  ;;  %v24_v3 = vmul.f32 %v22_v1, %v22_v1  ;;  %s51_s18 = sshll.u32 %s115_s0, 4  ;;  %s52_s18 = int_to_ptr.vmem [resolvable:$true] %s51_s18 }
  0x14   :  { %s88_s19 = scalar_lea.vmem %s52_s18, 256  ;;  %p93_p9 = scmp.lt.s32.totalorder %s52_s18, %s52_s18 }
  0x15   :  { %v25_v4 = vmul.f32 %v23_v2, %v21_v0  ;;  %v26_v5 = vmul.f32 %v24_v3, %v22_v1  ;;  %p89_p8 = scmp.ne.s32.totalorder %s52_s18, %s88_s19  ;;  %p94_p10 = scmp.lt.s32.totalorder %s88_s19, %s88_s19 }
  0x17   :  { %v27_v6 = vmul.f32 0.044715, %v25_v4  ;;  %v28_v7 = vmul.f32 0.044715, %v26_v5  ;;  %p95_p11 = por %p94_p10, %p93_p9 }
  0x19   :  { %v29_v8 = vadd.f32 %v27_v6, %v21_v0  ;;  %v30_v9 = vadd.f32 %v28_v7, %v22_v1  ;;  %p96_p12 = pnand %p95_p11, %p89_p8 }
  0x1b   :  { %v31_v10 = vmul.f32 0.7978846, %v29_v8  ;;  %v32_v11 = vmul.f32 0.7978846, %v30_v9 }
  0x1d   :  { %62 = vtanh.f32 %v31_v10 }
  0x1e   :  { %64 = vtanh.f32 %v32_v11 }
  0x27   :  { %v63_v12 = vpop.eup %62 }
  0x28   :  { %v65_v13 = vpop.eup %64  ;;  %v35_v14 = vadd.f32 1.0, %v63_v12 }
  0x29   :  { %v36_v15 = vadd.f32 1.0, %v65_v13 }
  0x2a   :  { %v37_v16 = vmul.f32 0.5, %v35_v14 }
  0x2b   :  { %v38_v17 = vmul.f32 0.5, %v36_v15 }
  0x2c   :  { %v39_v18 = vmul.f32 %v37_v16, %v21_v0 }
  0x2d   :  { %v40_v19 = vmul.f32 %v38_v17, %v22_v1 }
  0x2e   :  { %v41_v20 = vadd.f32 %v39_v18, %v21_v0 }
  0x2f   :  { %v42_v21 = vadd.f32 %v40_v19, %v22_v1 }
  0x30   :  { %43 = vst [vmem:[#allocation5] sm:$0xff] %v41_v20 }
  0x31   :  { %44 = vst [vmem:[#allocation5 + $0x8] sm:$0xff] %v42_v21 }
  0x32   :  { %99 = shalt.err (!%p96_p12)
}
  0x33   :  { %s100_s22 = scalar_lea.hbm %s151_s1, 256 }
  0x34   :  { %p101_p13 = scmp.ne.s32.totalorder %s151_s1, %s100_s22  ;;  %p104_p0 = scmp.lt.u32.totalorder %s100_s22, %s151_s1 }
  0x36   :  { %p106_p1 = pnand %p104_p0, %p101_p13 }
  0x38   :  { %109 = shalt.err (!%p106_p1)
}
  0x39   :  { %54 = dma.vmem_to_hbm [thread:$0]  %s52_s18, 256, %s151_s1, [#allocation4]  }
  0x3a   :  { %112 = dma.done.wait [#allocation4], 256  }
  0x3b   :  { %113 = vsyncadd [#allocation4], 4294967040 }
  0x3c   :  { %58 = vsyncpa [#allocation3], 1 }
  0x3d   :  { %59 = vsyncpa [#allocation4], 1 }

</bundles_post_ra>
